<compile_context>
chip_gen: v5e
topology: v5e:2x2
jax: 0.10.0
libtpu: 0.0.40
codegen_flags: <defaults>
</compile_context>

<pallas_src>
import jax
import jax.numpy as jnp
from jax.experimental import pallas as pl
from jax.experimental.pallas import tpu as pltpu

# ----------------------------- model config --------------------------------
EMBED_DIM = 32
NUM_HEADS = 4
DFF = 64
HEAD_DIM = EMBED_DIM // NUM_HEADS
LN_EPS = 1e-5  # PyTorch nn.LayerNorm default
VEC_ROWS = 8
VEC_WIDTH = 128


# ------------------------------ Pallas kernel ------------------------------
def encoder_layer_kernel(
    x_ref,      # (TB, S, E)  f32
    wqkv_ref,   # (E, 3E)     bf16 -- q-portion pre-scaled by 1/sqrt(head_dim)
    wo_ref,     # (E, E)      bf16
    w1_ref,     # (E, DFF)    bf16
    w2_ref,     # (DFF, E)    bf16
    vec_ref,    # (8, 128)    f32 packed 1-D params (biases / LN gamma & beta)
    out_ref,    # (TB, S, E)  f32
):
    TB, S, E = x_ref.shape
    rows = TB * S

    x = x_ref[...].reshape(rows, E)            # f32 (residual path stays f32)
    x_bf = x.astype(jnp.bfloat16)              # MXU operand copy

    # ---- unpack small vector params (hoisted once per grid step) ----
    vec = vec_ref[...]                         # (8, 128) f32
    b_qkv = vec[0:1, 0:3 * E]                  # (1, 3E)  (q bias pre-scaled)
    b_o   = vec[1:2, 0:E]
    g1    = vec[2:3, 0:E]
    beta1 = vec[3:4, 0:E]
    b_ff1 = vec[4:5, 0:DFF]
    b_ff2 = vec[5:6, 0:E]
    g2    = vec[6:7, 0:E]
    beta2 = vec[7:8, 0:E]

    # ones-vectors so row reductions ride the (idle) MXU instead of the XLU
    ones_e = jnp.ones((E, 1), jnp.float32)
    ones_s = jnp.ones((S, 1), jnp.float32)
    inv_e = jnp.float32(1.0 / E)

    def layer_norm(y, g, b):
        # mean / variance via MXU dots (f32 operands); rsqrt on the EUP.
        mu = jnp.dot(y, ones_e, preferred_element_type=jnp.float32) * inv_e
        yc = y - mu
        var = jnp.dot(yc * yc, ones_e, preferred_element_type=jnp.float32) * inv_e
        return yc * jax.lax.rsqrt(var + LN_EPS) * g + b

    # ---- fused Q/K/V projection (one MXU pass, bf16 operands, f32 acc) ----
    qkv = jnp.dot(x_bf, wqkv_ref[...], preferred_element_type=jnp.float32) + b_qkv
    q = qkv[:, 0:E].reshape(TB, S, E)
    k = qkv[:, E:2 * E].reshape(TB, S, E)
    v = qkv[:, 2 * E:3 * E].reshape(TB, S, E)

    # ---- multi-head self-attention, per-head accumulation into out-proj ----
    wo = wo_ref[...]                           # (E, E) bf16
    attn = None
    for h in range(NUM_HEADS):                 # static, small loop
        lo, hi = h * HEAD_DIM, (h + 1) * HEAD_DIM
        qh = q[:, :, lo:hi].astype(jnp.bfloat16)   # (TB, S, hd)
        kh = k[:, :, lo:hi].astype(jnp.bfloat16)
        vh = v[:, :, lo:hi].astype(jnp.bfloat16)
        # scores already include the 1/sqrt(hd) scale (folded into wq/bq)
        s = jnp.einsum('bqd,bkd->bqk', qh, kh,
                       preferred_element_type=jnp.float32)      # (TB, S, S) f32
        s = s - jnp.max(s, axis=-1, keepdims=True)              # row-max on XLU
        p = jnp.exp(s)                                          # EUP
        # softmax denominator on the MXU; normalize with the EUP reciprocal
        denom = jnp.dot(p.reshape(rows, S), ones_s,
                        preferred_element_type=jnp.float32)     # (rows, 1)
        p = p * pl.reciprocal(denom.reshape(TB, S, 1), approx=True)
        oh = jnp.einsum('bqk,bkd->bqd', p.astype(jnp.bfloat16), vh,
                        preferred_element_type=jnp.float32)     # (TB, S, hd)
        # accumulate the output projection per head (no lane concat, no zeros
        # init — consecutive dots so v7x's MRB can accumulate in place)
        part = jnp.dot(oh.reshape(rows, HEAD_DIM).astype(jnp.bfloat16),
                       wo[lo:hi, :], preferred_element_type=jnp.float32)
        attn = part if attn is None else attn + part
    attn = attn + b_o
    # dropout1: identity (eval mode)

    # ---- residual + LayerNorm 1 ----
    out1 = layer_norm(x + attn, g1, beta1)

    # ---- FeedForward (bf16 MXU operands, f32 accumulate / elementwise) ----
    h1 = jnp.dot(out1.astype(jnp.bfloat16), w1_ref[...],
                 preferred_element_type=jnp.float32) + b_ff1
    h1 = jnp.maximum(h1, 0.0)
    ffn = jnp.dot(h1.astype(jnp.bfloat16), w2_ref[...],
                  preferred_element_type=jnp.float32) + b_ff2
    # dropout2: identity (eval mode)

    # ---- residual + LayerNorm 2 ----
    out2 = layer_norm(out1 + ffn, g2, beta2)

    out_ref[...] = out2.reshape(TB, S, E)


# --------------------------- host-side packing ------------------------------
def _pack_params(p):
    """Fold 1/sqrt(head_dim) into the Q projection, fuse QKV weights, cast the
    matmul weights to bf16 (MXU operands), and pack all 1-D params into a
    single f32 (8, 128) slab."""
    assert 3 * EMBED_DIM <= VEC_WIDTH and DFF <= VEC_WIDTH, (
        "vec slab layout assumes 3*EMBED_DIM <= 128 and DFF <= 128")
    scale = 1.0 / jnp.sqrt(jnp.float32(HEAD_DIM))
    wqkv = jnp.concatenate([p["wq"] * scale, p["wk"], p["wv"]],
                           axis=1).astype(jnp.bfloat16)          # (E, 3E)
    bqkv = jnp.concatenate([p["bq"] * scale, p["bk"], p["bv"]], axis=1)

    def row(v):
        v = v.reshape(1, -1).astype(jnp.float32)
        return jnp.pad(v, ((0, 0), (0, VEC_WIDTH - v.shape[1])))

    vec = jnp.concatenate(
        [row(bqkv), row(p["bo"]), row(p["g1"]), row(p["beta1"]),
         row(p["bff1"]), row(p["bff2"]), row(p["g2"]), row(p["beta2"])],
        axis=0)                                                  # (8, 128) f32
    return (wqkv,
            p["wo"].astype(jnp.bfloat16),
            p["w1"].astype(jnp.bfloat16),
            p["w2"].astype(jnp.bfloat16),
            vec)


# --------------------- tile selection (VMEM + overhead aware) ---------------
def _vmem_budget_bytes():
    """Generation-aware scoped-VMEM budget (quarter of capacity), with a
    fallback that is safe on every generation (v7x: 64 MiB physical)."""
    try:
        return max(8 << 20, int(pltpu.get_tpu_info().vmem_capacity_bytes) // 4)
    except Exception:
        return 12 << 20


def _block_vmem_bytes(tb, S, E, dff):
    rows = tb * S
    io = 2 * 2 * rows * E * 4                                   # x/out blocks, dbl-buffered f32
    weights = 2 * 2 * (E * 3 * E + E * E + 2 * E * dff) \
        + 2 * VEC_ROWS * VEC_WIDTH * 4                          # bf16 weights + f32 slab, dbl-buf
    live = rows * (12 * E + dff) * 4                            # live f32 intermediates / row
    scores = tb * S * S * 4 * 3                                 # s, p (+bf16 copy), one head live
    return io + weights + live + scores


def _estimate_step_seconds(tb, S, E, dff):
    rows = tb * S
    flops = 2 * rows * E * (4 * E + 2 * dff) + 4 * rows * S * E
    bytes_moved = 2 * rows * E * 4
    return max(flops / 2.0e14, bytes_moved / 8.0e11)


def _choose_tb(B, S, E, dff, vmem_budget):
    """Largest batch tile whose block + live intermediates fit the VMEM budget.
    Splitting into >=2 grid steps (so v7x's two TensorCores both get work) is
    only done when a half-size step still carries well more than the ~0.35 us
    per-step pipeline overhead; on single-TC v5e/v6e and for tiny problems the
    extra step is pure overhead, so we collapse to grid=(1,)."""
    divisors = [d for d in range(1, B + 1)
                if B % d == 0 and _block_vmem_bytes(d, S, E, dff) <= vmem_budget]
    if not divisors:
        return 1
    tb = divisors[-1]
    if tb == B and len(divisors) > 1:
        half = divisors[-2]
        if _estimate_step_seconds(half, S, E, dff) > 0.7e-6:
            tb = half
    return tb


# ------------------------------ wrapper -------------------------------------
def encoder_layer(x, params, *, tb=None):
    """x: (B, S, E) float32.  params: dict of raw f32 weights (see init_params)."""
    B, S, E = x.shape
    assert E == EMBED_DIM
    if tb is None:
        tb = _choose_tb(B, S, E, DFF, _vmem_budget_bytes())
    assert B % tb == 0, "batch must be divisible by the batch tile"
    grid = (B // tb,)

    wqkv, wo, w1, w2, vec = _pack_params(params)

    in_specs = [
        pl.BlockSpec((tb, S, E), lambda i: (i, 0, 0)),
        pl.BlockSpec((E, 3 * E), lambda i: (0, 0)),
        pl.BlockSpec((E, E), lambda i: (0, 0)),
        pl.BlockSpec((E, DFF), lambda i: (0, 0)),
        pl.BlockSpec((DFF, E), lambda i: (0, 0)),
        pl.BlockSpec((VEC_ROWS, VEC_WIDTH), lambda i: (0, 0)),
    ]

    return pl.pallas_call(
        encoder_layer_kernel,
        out_shape=jax.ShapeDtypeStruct((B, S, E), jnp.float32),
        grid_spec=pltpu.PrefetchScalarGridSpec(
            num_scalar_prefetch=0,
            grid=grid,
            in_specs=in_specs,
            out_specs=pl.BlockSpec((tb, S, E), lambda i: (i, 0, 0)),
        ),
        compiler_params=pltpu.CompilerParams(
            dimension_semantics=("parallel",),
            vmem_limit_bytes=32 * 1024 * 1024,
        ),
    )(x, wqkv, wo, w1, w2, vec)


# --------------------------- parameter init ---------------------------------
def init_params(key):
    """Deterministic synthetic params. Linear weights are stored (in, out) so the
    kernel computes y = x @ W + b (equivalent to torch's x @ W_t.T + b)."""
    keys = jax.random.split(key, 16)

    def lin(k, fan_in, fan_out):
        bound = 1.0 / jnp.sqrt(jnp.float32(fan_in))
        kw, kb = jax.random.split(k)
        w = jax.random.uniform(kw, (fan_in, fan_out), jnp.float32, -bound, bound)
        b = jax.random.uniform(kb, (1, fan_out), jnp.float32, -bound, bound)
        return w, b

    p = {}
    p["wq"], p["bq"] = lin(keys[0], EMBED_DIM, EMBED_DIM)
    p["wk"], p["bk"] = lin(keys[1], EMBED_DIM, EMBED_DIM)
    p["wv"], p["bv"] = lin(keys[2], EMBED_DIM, EMBED_DIM)
    p["wo"], p["bo"] = lin(keys[3], EMBED_DIM, EMBED_DIM)
    p["w1"], p["bff1"] = lin(keys[4], EMBED_DIM, DFF)
    p["w2"], p["bff2"] = lin(keys[5], DFF, EMBED_DIM)
    p["g1"] = jnp.ones((1, EMBED_DIM), jnp.float32)
    p["beta1"] = jnp.zeros((1, EMBED_DIM), jnp.float32)
    p["g2"] = jnp.ones((1, EMBED_DIM), jnp.float32)
    p["beta2"] = jnp.zeros((1, EMBED_DIM), jnp.float32)
    return p


# --------------------------- pure-JAX reference ------------------------------
def encoder_layer_ref(x, p, dot_dtype=None):
    """Pure-JAX reference of the PyTorch module.  dot_dtype=jnp.bfloat16
    reproduces the kernel's MXU-operand precision (f32 accumulation,
    everything else f32)."""
    B, S, E = x.shape

    def mm(a, b):
        if dot_dtype is not None:
            a = a.astype(dot_dtype)
            b = b.astype(dot_dtype)
        return jnp.matmul(a, b, preferred_element_type=jnp.float32)

    q = mm(x, p["wq"]) + p["bq"]
    k = mm(x, p["wk"]) + p["bk"]
    v = mm(x, p["wv"]) + p["bv"]

    def split(t):
        return t.reshape(B, S, NUM_HEADS, HEAD_DIM).transpose(0, 2, 1, 3)

    qh, kh, vh = split(q), split(k), split(v)
    s = mm(qh, kh.transpose(0, 1, 3, 2)) / jnp.sqrt(jnp.float32(HEAD_DIM))
    a = jax.nn.softmax(s, axis=-1)
    o = mm(a, vh).transpose(0, 2, 1, 3).reshape(B, S, E)
    attn_out = mm(o, p["wo"]) + p["bo"]

    def ln(y, g, b):
        mu = jnp.mean(y, axis=-1, keepdims=True)
        var = jnp.mean((y - mu) ** 2, axis=-1, keepdims=True)
        return (y - mu) * jax.lax.rsqrt(var + LN_EPS) * g + b

    out1 = ln(x + attn_out, p["g1"], p["beta1"])
    ffn = mm(jnp.maximum(mm(out1, p["w1"]) + p["bff1"], 0.0), p["w2"]) + p["bff2"]
    return ln(out1 + ffn, p["g2"], p["beta2"])


# ------------------------------- main ---------------------------------------
if __name__ == "__main__":
    key = jax.random.PRNGKey(0)
    kx, kp = jax.random.split(key)

    B, S = 2, 8
    x = jax.random.normal(kx, (B, S, EMBED_DIM), jnp.float32)
    params = init_params(kp)

    out = jax.block_until_ready(encoder_layer(x, params))
    assert out.shape == (B, S, EMBED_DIM)

    # Structural check against a precision-matched reference (bf16 MXU
    # operands, f32 accumulation).  Residual differences come from the
    # approx-reciprocal softmax, MXU-based LN/softmax reductions, scale-folding
    # rounding, and accumulation order.
    ref_bf16 = encoder_layer_ref(x, params, dot_dtype=jnp.bfloat16)
    assert jnp.allclose(out, ref_bf16, rtol=1e-2, atol=1e-2), \
        "mismatch vs bf16-operand JAX reference"

    # Semantic check against the full-f32 reference.  Documented accuracy
    # tradeoff: bf16 MXU operands + approx EUP reciprocal give ~1e-2 worst-case
    # absolute error on the LayerNorm-scaled outputs.
    ref_f32 = encoder_layer_ref(x, params)
    assert jnp.allclose(out, ref_f32, rtol=2.5e-2, atol=2.5e-2), \
        "mismatch vs f32 JAX reference"

    print("KERNEL_OK")
</pallas_src>

<mosaic_0001>
module attributes {stable_mosaic.version = 11 : i64} {
  func.func @encoder_layer_kernel(%arg0: i32, %arg1: memref<2x8x32xf32, #tpu.memory_space<vmem>>, %arg2: memref<32x96xbf16, #tpu.memory_space<vmem>>, %arg3: memref<32x32xbf16, #tpu.memory_space<vmem>>, %arg4: memref<32x64xbf16, #tpu.memory_space<vmem>>, %arg5: memref<64x32xbf16, #tpu.memory_space<vmem>>, %arg6: memref<8x128xf32, #tpu.memory_space<vmem>>, %arg7: memref<2x8x32xf32, #tpu.memory_space<vmem>>) attributes {dimension_semantics = [#tpu.dimension_semantics<parallel>], iteration_bounds = array<i64: 1>, scalar_prefetch = 0 : i64, scratch_operands = 0 : i64, tpu.core_type = #tpu.core_type<tc>, window_params = [{transform_indices = @transform_0, window_bounds = array<i64: 2, 8, 32>}, {pipeline_mode = #tpu.pipeline_mode<synchronous>, transform_indices = @transform_1, window_bounds = array<i64: 32, 96>}, {pipeline_mode = #tpu.pipeline_mode<synchronous>, transform_indices = @transform_2, window_bounds = array<i64: 32, 32>}, {pipeline_mode = #tpu.pipeline_mode<synchronous>, transform_indices = @transform_3, window_bounds = array<i64: 32, 64>}, {pipeline_mode = #tpu.pipeline_mode<synchronous>, transform_indices = @transform_4, window_bounds = array<i64: 64, 32>}, {pipeline_mode = #tpu.pipeline_mode<synchronous>, transform_indices = @transform_5, window_bounds = array<i64: 8, 128>}, {transform_indices = @transform_6, window_bounds = array<i64: 2, 8, 32>}]} {
    %c0 = arith.constant 0 : index
    %c0_0 = arith.constant 0 : index
    %c0_1 = arith.constant 0 : index
    %0 = vector.load %arg1[%c0, %c0_0, %c0_1] : memref<2x8x32xf32, #tpu.memory_space<vmem>>, vector<2x8x32xf32>
    %1 = vector.shape_cast %0 : vector<2x8x32xf32> to vector<16x32xf32>
    %2 = arith.truncf %1 : vector<16x32xf32> to vector<16x32xbf16>
    %c0_2 = arith.constant 0 : index
    %c0_3 = arith.constant 0 : index
    %3 = vector.load %arg6[%c0_2, %c0_3] : memref<8x128xf32, #tpu.memory_space<vmem>>, vector<8x128xf32>
    %4 = vector.extract_strided_slice %3 {offsets = [0, 0], sizes = [1, 96], strides = [1, 1]} : vector<8x128xf32> to vector<1x96xf32>
    %5 = vector.extract_strided_slice %3 {offsets = [1, 0], sizes = [1, 32], strides = [1, 1]} : vector<8x128xf32> to vector<1x32xf32>
    %6 = vector.extract_strided_slice %3 {offsets = [2, 0], sizes = [1, 32], strides = [1, 1]} : vector<8x128xf32> to vector<1x32xf32>
    %7 = vector.extract_strided_slice %3 {offsets = [3, 0], sizes = [1, 32], strides = [1, 1]} : vector<8x128xf32> to vector<1x32xf32>
    %8 = vector.extract_strided_slice %3 {offsets = [4, 0], sizes = [1, 64], strides = [1, 1]} : vector<8x128xf32> to vector<1x64xf32>
    %9 = vector.extract_strided_slice %3 {offsets = [5, 0], sizes = [1, 32], strides = [1, 1]} : vector<8x128xf32> to vector<1x32xf32>
    %10 = vector.extract_strided_slice %3 {offsets = [6, 0], sizes = [1, 32], strides = [1, 1]} : vector<8x128xf32> to vector<1x32xf32>
    %11 = vector.extract_strided_slice %3 {offsets = [7, 0], sizes = [1, 32], strides = [1, 1]} : vector<8x128xf32> to vector<1x32xf32>
    %cst = arith.constant 1.000000e+00 : f32
    %12 = vector.broadcast %cst : f32 to vector<32x1xf32>
    %cst_4 = arith.constant 1.000000e+00 : f32
    %13 = vector.broadcast %cst_4 : f32 to vector<8x1xf32>
    %c0_5 = arith.constant 0 : index
    %c0_6 = arith.constant 0 : index
    %14 = vector.load %arg2[%c0_5, %c0_6] : memref<32x96xbf16, #tpu.memory_space<vmem>>, vector<32x96xbf16>
    %cst_7 = arith.constant dense<0.000000e+00> : vector<16x96xf32>
    %15 = tpu.matmul %2, %14, %cst_7 {dimension_numbers = #tpu.dot_dimension_numbers<[1], [0], [0], [1], [0, 0, 1, 1], [], []>} : vector<16x32xbf16>, vector<32x96xbf16>, vector<16x96xf32> -> vector<16x96xf32>
    %16 = vector.broadcast %4 : vector<1x96xf32> to vector<16x96xf32>
    %17 = arith.addf %15, %16 : vector<16x96xf32>
    %18 = vector.extract_strided_slice %17 {offsets = [0, 0], sizes = [16, 32], strides = [1, 1]} : vector<16x96xf32> to vector<16x32xf32>
    %19 = vector.shape_cast %18 : vector<16x32xf32> to vector<2x8x32xf32>
    %20 = vector.extract_strided_slice %17 {offsets = [0, 32], sizes = [16, 32], strides = [1, 1]} : vector<16x96xf32> to vector<16x32xf32>
    %21 = vector.shape_cast %20 : vector<16x32xf32> to vector<2x8x32xf32>
    %22 = vector.extract_strided_slice %17 {offsets = [0, 64], sizes = [16, 32], strides = [1, 1]} : vector<16x96xf32> to vector<16x32xf32>
    %23 = vector.shape_cast %22 : vector<16x32xf32> to vector<2x8x32xf32>
    %c0_8 = arith.constant 0 : index
    %c0_9 = arith.constant 0 : index
    %24 = vector.load %arg3[%c0_8, %c0_9] : memref<32x32xbf16, #tpu.memory_space<vmem>>, vector<32x32xbf16>
    %25 = vector.extract_strided_slice %19 {offsets = [0, 0, 0], sizes = [2, 8, 8], strides = [1, 1, 1]} : vector<2x8x32xf32> to vector<2x8x8xf32>
    %26 = arith.truncf %25 : vector<2x8x8xf32> to vector<2x8x8xbf16>
    %27 = vector.extract_strided_slice %21 {offsets = [0, 0, 0], sizes = [2, 8, 8], strides = [1, 1, 1]} : vector<2x8x32xf32> to vector<2x8x8xf32>
    %28 = arith.truncf %27 : vector<2x8x8xf32> to vector<2x8x8xbf16>
    %29 = vector.extract_strided_slice %23 {offsets = [0, 0, 0], sizes = [2, 8, 8], strides = [1, 1, 1]} : vector<2x8x32xf32> to vector<2x8x8xf32>
    %30 = arith.truncf %29 : vector<2x8x8xf32> to vector<2x8x8xbf16>
    "tpu.trace_start"() <{level = 10 : i32, message = "bqd,bkd->bqk"}> : () -> ()
    %cst_10 = arith.constant dense<0.000000e+00> : vector<2x8x8xf32>
    %31 = tpu.matmul %26, %28, %cst_10 {dimension_numbers = #tpu.dot_dimension_numbers<[2], [2], [1], [1], [0, 0, 0, 1, 1, 1], [0], [0]>} : vector<2x8x8xbf16>, vector<2x8x8xbf16>, vector<2x8x8xf32> -> vector<2x8x8xf32>
    "tpu.trace_stop"() : () -> ()
    %cst_11 = arith.constant dense<0xFF800000> : vector<2x8xf32>
    %32 = vector.multi_reduction <maximumf>, %31, %cst_11 [2] : vector<2x8x8xf32> to vector<2x8xf32>
    %33 = vector.shape_cast %32 : vector<2x8xf32> to vector<2x8x1xf32>
    %34 = vector.broadcast %33 : vector<2x8x1xf32> to vector<2x8x8xf32>
    %35 = arith.subf %31, %34 : vector<2x8x8xf32>
    %36 = math.exp %35 : vector<2x8x8xf32>
    %37 = vector.shape_cast %36 : vector<2x8x8xf32> to vector<16x8xf32>
    %cst_12 = arith.constant dense<0.000000e+00> : vector<16x1xf32>
    %38 = tpu.matmul %37, %13, %cst_12 {dimension_numbers = #tpu.dot_dimension_numbers<[1], [0], [0], [1], [0, 0, 1, 1], [], []>} : vector<16x8xf32>, vector<8x1xf32>, vector<16x1xf32> -> vector<16x1xf32>
    %39 = vector.shape_cast %38 : vector<16x1xf32> to vector<2x8x1xf32>
    %40 = tpu.reciprocal %39 {approx = true} : vector<2x8x1xf32> -> vector<2x8x1xf32>
    %41 = vector.broadcast %40 : vector<2x8x1xf32> to vector<2x8x8xf32>
    %42 = arith.mulf %36, %41 : vector<2x8x8xf32>
    %43 = arith.truncf %42 : vector<2x8x8xf32> to vector<2x8x8xbf16>
    "tpu.trace_start"() <{level = 10 : i32, message = "bqk,bkd->bqd"}> : () -> ()
    %cst_13 = arith.constant dense<0.000000e+00> : vector<2x8x8xf32>
    %44 = tpu.matmul %43, %30, %cst_13 {dimension_numbers = #tpu.dot_dimension_numbers<[2], [1], [1], [2], [0, 0, 0, 1, 1, 2], [0], [0]>} : vector<2x8x8xbf16>, vector<2x8x8xbf16>, vector<2x8x8xf32> -> vector<2x8x8xf32>
    "tpu.trace_stop"() : () -> ()
    %45 = vector.shape_cast %44 : vector<2x8x8xf32> to vector<16x8xf32>
    %46 = arith.truncf %45 : vector<16x8xf32> to vector<16x8xbf16>
    %47 = vector.extract_strided_slice %24 {offsets = [0, 0], sizes = [8, 32], strides = [1, 1]} : vector<32x32xbf16> to vector<8x32xbf16>
    %cst_14 = arith.constant dense<0.000000e+00> : vector<16x32xf32>
    %48 = tpu.matmul %46, %47, %cst_14 {dimension_numbers = #tpu.dot_dimension_numbers<[1], [0], [0], [1], [0, 0, 1, 1], [], []>} : vector<16x8xbf16>, vector<8x32xbf16>, vector<16x32xf32> -> vector<16x32xf32>
    %49 = vector.extract_strided_slice %19 {offsets = [0, 0, 8], sizes = [2, 8, 8], strides = [1, 1, 1]} : vector<2x8x32xf32> to vector<2x8x8xf32>
    %50 = arith.truncf %49 : vector<2x8x8xf32> to vector<2x8x8xbf16>
    %51 = vector.extract_strided_slice %21 {offsets = [0, 0, 8], sizes = [2, 8, 8], strides = [1, 1, 1]} : vector<2x8x32xf32> to vector<2x8x8xf32>
    %52 = arith.truncf %51 : vector<2x8x8xf32> to vector<2x8x8xbf16>
    %53 = vector.extract_strided_slice %23 {offsets = [0, 0, 8], sizes = [2, 8, 8], strides = [1, 1, 1]} : vector<2x8x32xf32> to vector<2x8x8xf32>
    %54 = arith.truncf %53 : vector<2x8x8xf32> to vector<2x8x8xbf16>
    "tpu.trace_start"() <{level = 10 : i32, message = "bqd,bkd->bqk"}> : () -> ()
    %cst_15 = arith.constant dense<0.000000e+00> : vector<2x8x8xf32>
    %55 = tpu.matmul %50, %52, %cst_15 {dimension_numbers = #tpu.dot_dimension_numbers<[2], [2], [1], [1], [0, 0, 0, 1, 1, 1], [0], [0]>} : vector<2x8x8xbf16>, vector<2x8x8xbf16>, vector<2x8x8xf32> -> vector<2x8x8xf32>
    "tpu.trace_stop"() : () -> ()
    %cst_16 = arith.constant dense<0xFF800000> : vector<2x8xf32>
    %56 = vector.multi_reduction <maximumf>, %55, %cst_16 [2] : vector<2x8x8xf32> to vector<2x8xf32>
    %57 = vector.shape_cast %56 : vector<2x8xf32> to vector<2x8x1xf32>
    %58 = vector.broadcast %57 : vector<2x8x1xf32> to vector<2x8x8xf32>
    %59 = arith.subf %55, %58 : vector<2x8x8xf32>
    %60 = math.exp %59 : vector<2x8x8xf32>
    %61 = vector.shape_cast %60 : vector<2x8x8xf32> to vector<16x8xf32>
    %cst_17 = arith.constant dense<0.000000e+00> : vector<16x1xf32>
    %62 = tpu.matmul %61, %13, %cst_17 {dimension_numbers = #tpu.dot_dimension_numbers<[1], [0], [0], [1], [0, 0, 1, 1], [], []>} : vector<16x8xf32>, vector<8x1xf32>, vector<16x1xf32> -> vector<16x1xf32>
    %63 = vector.shape_cast %62 : vector<16x1xf32> to vector<2x8x1xf32>
    %64 = tpu.reciprocal %63 {approx = true} : vector<2x8x1xf32> -> vector<2x8x1xf32>
    %65 = vector.broadcast %64 : vector<2x8x1xf32> to vector<2x8x8xf32>
    %66 = arith.mulf %60, %65 : vector<2x8x8xf32>
    %67 = arith.truncf %66 : vector<2x8x8xf32> to vector<2x8x8xbf16>
    "tpu.trace_start"() <{level = 10 : i32, message = "bqk,bkd->bqd"}> : () -> ()
    %cst_18 = arith.constant dense<0.000000e+00> : vector<2x8x8xf32>
    %68 = tpu.matmul %67, %54, %cst_18 {dimension_numbers = #tpu.dot_dimension_numbers<[2], [1], [1], [2], [0, 0, 0, 1, 1, 2], [0], [0]>} : vector<2x8x8xbf16>, vector<2x8x8xbf16>, vector<2x8x8xf32> -> vector<2x8x8xf32>
    "tpu.trace_stop"() : () -> ()
    %69 = vector.shape_cast %68 : vector<2x8x8xf32> to vector<16x8xf32>
    %70 = arith.truncf %69 : vector<16x8xf32> to vector<16x8xbf16>
    %71 = vector.extract_strided_slice %24 {offsets = [8, 0], sizes = [8, 32], strides = [1, 1]} : vector<32x32xbf16> to vector<8x32xbf16>
    %cst_19 = arith.constant dense<0.000000e+00> : vector<16x32xf32>
    %72 = tpu.matmul %70, %71, %cst_19 {dimension_numbers = #tpu.dot_dimension_numbers<[1], [0], [0], [1], [0, 0, 1, 1], [], []>} : vector<16x8xbf16>, vector<8x32xbf16>, vector<16x32xf32> -> vector<16x32xf32>
    %73 = arith.addf %48, %72 : vector<16x32xf32>
    %74 = vector.extract_strided_slice %19 {offsets = [0, 0, 16], sizes = [2, 8, 8], strides = [1, 1, 1]} : vector<2x8x32xf32> to vector<2x8x8xf32>
    %75 = arith.truncf %74 : vector<2x8x8xf32> to vector<2x8x8xbf16>
    %76 = vector.extract_strided_slice %21 {offsets = [0, 0, 16], sizes = [2, 8, 8], strides = [1, 1, 1]} : vector<2x8x32xf32> to vector<2x8x8xf32>
    %77 = arith.truncf %76 : vector<2x8x8xf32> to vector<2x8x8xbf16>
    %78 = vector.extract_strided_slice %23 {offsets = [0, 0, 16], sizes = [2, 8, 8], strides = [1, 1, 1]} : vector<2x8x32xf32> to vector<2x8x8xf32>
    %79 = arith.truncf %78 : vector<2x8x8xf32> to vector<2x8x8xbf16>
    "tpu.trace_start"() <{level = 10 : i32, message = "bqd,bkd->bqk"}> : () -> ()
    %cst_20 = arith.constant dense<0.000000e+00> : vector<2x8x8xf32>
    %80 = tpu.matmul %75, %77, %cst_20 {dimension_numbers = #tpu.dot_dimension_numbers<[2], [2], [1], [1], [0, 0, 0, 1, 1, 1], [0], [0]>} : vector<2x8x8xbf16>, vector<2x8x8xbf16>, vector<2x8x8xf32> -> vector<2x8x8xf32>
    "tpu.trace_stop"() : () -> ()
    %cst_21 = arith.constant dense<0xFF800000> : vector<2x8xf32>
    %81 = vector.multi_reduction <maximumf>, %80, %cst_21 [2] : vector<2x8x8xf32> to vector<2x8xf32>
    %82 = vector.shape_cast %81 : vector<2x8xf32> to vector<2x8x1xf32>
    %83 = vector.broadcast %82 : vector<2x8x1xf32> to vector<2x8x8xf32>
    %84 = arith.subf %80, %83 : vector<2x8x8xf32>
    %85 = math.exp %84 : vector<2x8x8xf32>
    %86 = vector.shape_cast %85 : vector<2x8x8xf32> to vector<16x8xf32>
    %cst_22 = arith.constant dense<0.000000e+00> : vector<16x1xf32>
    %87 = tpu.matmul %86, %13, %cst_22 {dimension_numbers = #tpu.dot_dimension_numbers<[1], [0], [0], [1], [0, 0, 1, 1], [], []>} : vector<16x8xf32>, vector<8x1xf32>, vector<16x1xf32> -> vector<16x1xf32>
    %88 = vector.shape_cast %87 : vector<16x1xf32> to vector<2x8x1xf32>
    %89 = tpu.reciprocal %88 {approx = true} : vector<2x8x1xf32> -> vector<2x8x1xf32>
    %90 = vector.broadcast %89 : vector<2x8x1xf32> to vector<2x8x8xf32>
    %91 = arith.mulf %85, %90 : vector<2x8x8xf32>
    %92 = arith.truncf %91 : vector<2x8x8xf32> to vector<2x8x8xbf16>
    "tpu.trace_start"() <{level = 10 : i32, message = "bqk,bkd->bqd"}> : () -> ()
    %cst_23 = arith.constant dense<0.000000e+00> : vector<2x8x8xf32>
    %93 = tpu.matmul %92, %79, %cst_23 {dimension_numbers = #tpu.dot_dimension_numbers<[2], [1], [1], [2], [0, 0, 0, 1, 1, 2], [0], [0]>} : vector<2x8x8xbf16>, vector<2x8x8xbf16>, vector<2x8x8xf32> -> vector<2x8x8xf32>
    "tpu.trace_stop"() : () -> ()
    %94 = vector.shape_cast %93 : vector<2x8x8xf32> to vector<16x8xf32>
    %95 = arith.truncf %94 : vector<16x8xf32> to vector<16x8xbf16>
    %96 = vector.extract_strided_slice %24 {offsets = [16, 0], sizes = [8, 32], strides = [1, 1]} : vector<32x32xbf16> to vector<8x32xbf16>
    %cst_24 = arith.constant dense<0.000000e+00> : vector<16x32xf32>
    %97 = tpu.matmul %95, %96, %cst_24 {dimension_numbers = #tpu.dot_dimension_numbers<[1], [0], [0], [1], [0, 0, 1, 1], [], []>} : vector<16x8xbf16>, vector<8x32xbf16>, vector<16x32xf32> -> vector<16x32xf32>
    %98 = arith.addf %73, %97 : vector<16x32xf32>
    %99 = vector.extract_strided_slice %19 {offsets = [0, 0, 24], sizes = [2, 8, 8], strides = [1, 1, 1]} : vector<2x8x32xf32> to vector<2x8x8xf32>
    %100 = arith.truncf %99 : vector<2x8x8xf32> to vector<2x8x8xbf16>
    %101 = vector.extract_strided_slice %21 {offsets = [0, 0, 24], sizes = [2, 8, 8], strides = [1, 1, 1]} : vector<2x8x32xf32> to vector<2x8x8xf32>
    %102 = arith.truncf %101 : vector<2x8x8xf32> to vector<2x8x8xbf16>
    %103 = vector.extract_strided_slice %23 {offsets = [0, 0, 24], sizes = [2, 8, 8], strides = [1, 1, 1]} : vector<2x8x32xf32> to vector<2x8x8xf32>
    %104 = arith.truncf %103 : vector<2x8x8xf32> to vector<2x8x8xbf16>
    "tpu.trace_start"() <{level = 10 : i32, message = "bqd,bkd->bqk"}> : () -> ()
    %cst_25 = arith.constant dense<0.000000e+00> : vector<2x8x8xf32>
    %105 = tpu.matmul %100, %102, %cst_25 {dimension_numbers = #tpu.dot_dimension_numbers<[2], [2], [1], [1], [0, 0, 0, 1, 1, 1], [0], [0]>} : vector<2x8x8xbf16>, vector<2x8x8xbf16>, vector<2x8x8xf32> -> vector<2x8x8xf32>
    "tpu.trace_stop"() : () -> ()
    %cst_26 = arith.constant dense<0xFF800000> : vector<2x8xf32>
    %106 = vector.multi_reduction <maximumf>, %105, %cst_26 [2] : vector<2x8x8xf32> to vector<2x8xf32>
    %107 = vector.shape_cast %106 : vector<2x8xf32> to vector<2x8x1xf32>
    %108 = vector.broadcast %107 : vector<2x8x1xf32> to vector<2x8x8xf32>
    %109 = arith.subf %105, %108 : vector<2x8x8xf32>
    %110 = math.exp %109 : vector<2x8x8xf32>
    %111 = vector.shape_cast %110 : vector<2x8x8xf32> to vector<16x8xf32>
    %cst_27 = arith.constant dense<0.000000e+00> : vector<16x1xf32>
    %112 = tpu.matmul %111, %13, %cst_27 {dimension_numbers = #tpu.dot_dimension_numbers<[1], [0], [0], [1], [0, 0, 1, 1], [], []>} : vector<16x8xf32>, vector<8x1xf32>, vector<16x1xf32> -> vector<16x1xf32>
    %113 = vector.shape_cast %112 : vector<16x1xf32> to vector<2x8x1xf32>
    %114 = tpu.reciprocal %113 {approx = true} : vector<2x8x1xf32> -> vector<2x8x1xf32>
    %115 = vector.broadcast %114 : vector<2x8x1xf32> to vector<2x8x8xf32>
    %116 = arith.mulf %110, %115 : vector<2x8x8xf32>
    %117 = arith.truncf %116 : vector<2x8x8xf32> to vector<2x8x8xbf16>
    "tpu.trace_start"() <{level = 10 : i32, message = "bqk,bkd->bqd"}> : () -> ()
    %cst_28 = arith.constant dense<0.000000e+00> : vector<2x8x8xf32>
    %118 = tpu.matmul %117, %104, %cst_28 {dimension_numbers = #tpu.dot_dimension_numbers<[2], [1], [1], [2], [0, 0, 0, 1, 1, 2], [0], [0]>} : vector<2x8x8xbf16>, vector<2x8x8xbf16>, vector<2x8x8xf32> -> vector<2x8x8xf32>
    "tpu.trace_stop"() : () -> ()
    %119 = vector.shape_cast %118 : vector<2x8x8xf32> to vector<16x8xf32>
    %120 = arith.truncf %119 : vector<16x8xf32> to vector<16x8xbf16>
    %121 = vector.extract_strided_slice %24 {offsets = [24, 0], sizes = [8, 32], strides = [1, 1]} : vector<32x32xbf16> to vector<8x32xbf16>
    %cst_29 = arith.constant dense<0.000000e+00> : vector<16x32xf32>
    %122 = tpu.matmul %120, %121, %cst_29 {dimension_numbers = #tpu.dot_dimension_numbers<[1], [0], [0], [1], [0, 0, 1, 1], [], []>} : vector<16x8xbf16>, vector<8x32xbf16>, vector<16x32xf32> -> vector<16x32xf32>
    %123 = arith.addf %98, %122 : vector<16x32xf32>
    %124 = vector.broadcast %5 : vector<1x32xf32> to vector<16x32xf32>
    %125 = arith.addf %123, %124 : vector<16x32xf32>
    %126 = arith.addf %1, %125 : vector<16x32xf32>
    %cst_30 = arith.constant dense<0.000000e+00> : vector<16x1xf32>
    %127 = tpu.matmul %126, %12, %cst_30 {dimension_numbers = #tpu.dot_dimension_numbers<[1], [0], [0], [1], [0, 0, 1, 1], [], []>} : vector<16x32xf32>, vector<32x1xf32>, vector<16x1xf32> -> vector<16x1xf32>
    %cst_31 = arith.constant 3.125000e-02 : f32
    %128 = vector.broadcast %cst_31 : f32 to vector<16x1xf32>
    %129 = arith.mulf %127, %128 : vector<16x1xf32>
    %130 = vector.broadcast %129 : vector<16x1xf32> to vector<16x32xf32>
    %131 = arith.subf %126, %130 : vector<16x32xf32>
    %132 = arith.mulf %131, %131 : vector<16x32xf32>
    %cst_32 = arith.constant dense<0.000000e+00> : vector<16x1xf32>
    %133 = tpu.matmul %132, %12, %cst_32 {dimension_numbers = #tpu.dot_dimension_numbers<[1], [0], [0], [1], [0, 0, 1, 1], [], []>} : vector<16x32xf32>, vector<32x1xf32>, vector<16x1xf32> -> vector<16x1xf32>
    %cst_33 = arith.constant 3.125000e-02 : f32
    %134 = vector.broadcast %cst_33 : f32 to vector<16x1xf32>
    %135 = arith.mulf %133, %134 : vector<16x1xf32>
    %cst_34 = arith.constant 9.99999974E-6 : f32
    %136 = vector.broadcast %cst_34 : f32 to vector<16x1xf32>
    %137 = arith.addf %135, %136 : vector<16x1xf32>
    %138 = math.rsqrt %137 : vector<16x1xf32>
    %139 = vector.broadcast %138 : vector<16x1xf32> to vector<16x32xf32>
    %140 = arith.mulf %131, %139 : vector<16x32xf32>
    %141 = vector.broadcast %6 : vector<1x32xf32> to vector<16x32xf32>
    %142 = arith.mulf %140, %141 : vector<16x32xf32>
    %143 = vector.broadcast %7 : vector<1x32xf32> to vector<16x32xf32>
    %144 = arith.addf %142, %143 : vector<16x32xf32>
    %145 = arith.truncf %144 : vector<16x32xf32> to vector<16x32xbf16>
    %c0_35 = arith.constant 0 : index
    %c0_36 = arith.constant 0 : index
    %146 = vector.load %arg4[%c0_35, %c0_36] : memref<32x64xbf16, #tpu.memory_space<vmem>>, vector<32x64xbf16>
    %cst_37 = arith.constant dense<0.000000e+00> : vector<16x64xf32>
    %147 = tpu.matmul %145, %146, %cst_37 {dimension_numbers = #tpu.dot_dimension_numbers<[1], [0], [0], [1], [0, 0, 1, 1], [], []>} : vector<16x32xbf16>, vector<32x64xbf16>, vector<16x64xf32> -> vector<16x64xf32>
    %148 = vector.broadcast %8 : vector<1x64xf32> to vector<16x64xf32>
    %149 = arith.addf %147, %148 : vector<16x64xf32>
    %cst_38 = arith.constant 0.000000e+00 : f32
    %150 = vector.broadcast %cst_38 : f32 to vector<16x64xf32>
    %151 = arith.maximumf %149, %150 : vector<16x64xf32>
    %152 = arith.truncf %151 : vector<16x64xf32> to vector<16x64xbf16>
    %c0_39 = arith.constant 0 : index
    %c0_40 = arith.constant 0 : index
    %153 = vector.load %arg5[%c0_39, %c0_40] : memref<64x32xbf16, #tpu.memory_space<vmem>>, vector<64x32xbf16>
    %cst_41 = arith.constant dense<0.000000e+00> : vector<16x32xf32>
    %154 = tpu.matmul %152, %153, %cst_41 {dimension_numbers = #tpu.dot_dimension_numbers<[1], [0], [0], [1], [0, 0, 1, 1], [], []>} : vector<16x64xbf16>, vector<64x32xbf16>, vector<16x32xf32> -> vector<16x32xf32>
    %155 = vector.broadcast %9 : vector<1x32xf32> to vector<16x32xf32>
    %156 = arith.addf %154, %155 : vector<16x32xf32>
    %157 = arith.addf %144, %156 : vector<16x32xf32>
    %cst_42 = arith.constant dense<0.000000e+00> : vector<16x1xf32>
    %158 = tpu.matmul %157, %12, %cst_42 {dimension_numbers = #tpu.dot_dimension_numbers<[1], [0], [0], [1], [0, 0, 1, 1], [], []>} : vector<16x32xf32>, vector<32x1xf32>, vector<16x1xf32> -> vector<16x1xf32>
    %cst_43 = arith.constant 3.125000e-02 : f32
    %159 = vector.broadcast %cst_43 : f32 to vector<16x1xf32>
    %160 = arith.mulf %158, %159 : vector<16x1xf32>
    %161 = vector.broadcast %160 : vector<16x1xf32> to vector<16x32xf32>
    %162 = arith.subf %157, %161 : vector<16x32xf32>
    %163 = arith.mulf %162, %162 : vector<16x32xf32>
    %cst_44 = arith.constant dense<0.000000e+00> : vector<16x1xf32>
    %164 = tpu.matmul %163, %12, %cst_44 {dimension_numbers = #tpu.dot_dimension_numbers<[1], [0], [0], [1], [0, 0, 1, 1], [], []>} : vector<16x32xf32>, vector<32x1xf32>, vector<16x1xf32> -> vector<16x1xf32>
    %cst_45 = arith.constant 3.125000e-02 : f32
    %165 = vector.broadcast %cst_45 : f32 to vector<16x1xf32>
    %166 = arith.mulf %164, %165 : vector<16x1xf32>
    %cst_46 = arith.constant 9.99999974E-6 : f32
    %167 = vector.broadcast %cst_46 : f32 to vector<16x1xf32>
    %168 = arith.addf %166, %167 : vector<16x1xf32>
    %169 = math.rsqrt %168 : vector<16x1xf32>
    %170 = vector.broadcast %169 : vector<16x1xf32> to vector<16x32xf32>
    %171 = arith.mulf %162, %170 : vector<16x32xf32>
    %172 = vector.broadcast %10 : vector<1x32xf32> to vector<16x32xf32>
    %173 = arith.mulf %171, %172 : vector<16x32xf32>
    %174 = vector.broadcast %11 : vector<1x32xf32> to vector<16x32xf32>
    %175 = arith.addf %173, %174 : vector<16x32xf32>
    %176 = vector.shape_cast %175 : vector<16x32xf32> to vector<2x8x32xf32>
    %c0_47 = arith.constant 0 : index
    %c0_48 = arith.constant 0 : index
    %c0_49 = arith.constant 0 : index
    %177 = vector.load %arg7[%c0_47, %c0_48, %c0_49] : memref<2x8x32xf32, #tpu.memory_space<vmem>>, vector<2x8x32xf32>
    tpu.vector_store %arg7[%c0_47, %c0_48, %c0_49], %176 {strides = array<i32>} : memref<2x8x32xf32, #tpu.memory_space<vmem>>, vector<2x8x32xf32>,
    return
  }
  func.func @transform_0(%arg0: i32) -> (i32, i32, i32) {
    %c0_i32 = arith.constant 0 : i32
    %c0_i32_0 = arith.constant 0 : i32
    %c0_i32_1 = arith.constant 0 : i32
    return %arg0, %c0_i32, %c0_i32_0 : i32, i32, i32
  }
  func.func @transform_1(%arg0: i32) -> (i32, i32) {
    %c0_i32 = arith.constant 0 : i32
    %c0_i32_0 = arith.constant 0 : i32
    %c0_i32_1 = arith.constant 0 : i32
    return %c0_i32, %c0_i32_0 : i32, i32
  }
  func.func @transform_2(%arg0: i32) -> (i32, i32) {
    %c0_i32 = arith.constant 0 : i32
    %c0_i32_0 = arith.constant 0 : i32
    %c0_i32_1 = arith.constant 0 : i32
    return %c0_i32, %c0_i32_0 : i32, i32
  }
  func.func @transform_3(%arg0: i32) -> (i32, i32) {
    %c0_i32 = arith.constant 0 : i32
    %c0_i32_0 = arith.constant 0 : i32
    %c0_i32_1 = arith.constant 0 : i32
    return %c0_i32, %c0_i32_0 : i32, i32
  }
  func.func @transform_4(%arg0: i32) -> (i32, i32) {
    %c0_i32 = arith.constant 0 : i32
    %c0_i32_0 = arith.constant 0 : i32
    %c0_i32_1 = arith.constant 0 : i32
    return %c0_i32, %c0_i32_0 : i32, i32
  }
  func.func @transform_5(%arg0: i32) -> (i32, i32) {
    %c0_i32 = arith.constant 0 : i32
    %c0_i32_0 = arith.constant 0 : i32
    %c0_i32_1 = arith.constant 0 : i32
    return %c0_i32, %c0_i32_0 : i32, i32
  }
  func.func @transform_6(%arg0: i32) -> (i32, i32, i32) {
    %c0_i32 = arith.constant 0 : i32
    %c0_i32_0 = arith.constant 0 : i32
    %c0_i32_1 = arith.constant 0 : i32
    return %arg0, %c0_i32, %c0_i32_0 : i32, i32, i32
  }
}

</mosaic_0001>

<bundles_post_ra>
// kernel: tpu_custom_call.1
= control target key start
LH: loop header
LB: loop body
LE: loop exit
PB: predicated region body
PF: predicated region fallthrough
CT: control target
= control target key end

     0   :  { %11 = vsyncpa [#allocation3], 0  ;;  %s1601_s0 = inlined_call_operand.vmem [shape: f32[2,8,32], index: 0, kind: input, shape index: {}]   ;;  %s1602_s1 = inlined_call_operand.vmem [shape: bf16[32,96], index: 1, kind: input, shape index: {}]   ;;  %s1603_s2 = inlined_call_operand.vmem [shape: bf16[32,32], index: 2, kind: input, shape index: {}]   ;;  %s1604_s3 = inlined_call_operand.hbm [shape: bf16[32,64], index: 3, kind: input, shape index: {}]   ;;  %s1605_s4 = inlined_call_operand.vmem [shape: bf16[64,32], index: 4, kind: input, shape index: {}]   ;;  %s1606_s5 = inlined_call_operand.hbm [shape: f32[8,128], index: 5, kind: input, shape index: {}]   ;;  %s1607_s6 = inlined_call_operand.hbm [shape: f32[2,8,32], index: 6, kind: output, shape index: {}]  }
   0x1   :  { %12 = vsyncpa [#allocation6], 0 }
   0x2   :  { %13 = vsyncpa [#allocation4], 0  ;;  %s24_s23 = sshll.u32 %s1604_s3, 4  ;;  %s1342_s24 = smov [#allocation2]   ;;  %s25_s23 = int_to_ptr.hbm [resolvable:$true] %s24_s23 }
   0x3   :  { %s26_s25 = sshll.u32 %s1342_s24, 4  ;;  %s40_s28 = sshll.u32 %s1606_s5, 4  ;;  %s27_s25 = int_to_ptr.vmem [resolvable:$true] %s26_s25  ;;  %s41_s28 = int_to_ptr.hbm [resolvable:$true] %s40_s28 }
   0x4   :  { %s1343_s29 = smov 64   ;;  %s1344_s30 = smov 4  }
   0x5   :  { %32 = dma.hbm_to_vmem [thread:$0]  %s25_s23, 256, %s27_s25, [#allocation3], %s1343_s29, %s1343_s29, %s1344_s30  }
   0x6   :  { %s1345_s7 = smov [#allocation5]  }
   0x7   :  { %s42_s8 = sshll.u32 %s1345_s7, 4  ;;  %s43_s8 = int_to_ptr.vmem [resolvable:$true] %s42_s8 }
   0x8   :  { %45 = dma.hbm_to_vmem [thread:$0]  %s41_s28, 128, %s43_s8, [#allocation6]  }
   0x9   :  { %1336 = dma.done.wait [#allocation3], 256  }
   0xa   :  { %1337 = vsyncadd [#allocation3], 4294967040 }
   0xb   :  { %1338 = dma.done.wait [#allocation6], 128  }
   0xc   :  { %1339 = vsyncadd [#allocation6], 4294967168  ;;  %v1194_v0 = vld [vmem:[%s1602_s1 + $0x8] sm:$0xff]  ;;  %v1193_v1 = vld [vmem:[%s1602_s1] sm:$0xff]  ;;  %vm76_vm0 = vcmask 261120   ;;  %s1347_s1 = smov 96  }
   0xd   :  { %86 = vmatpush.bf16.msra.mxu0 %v1194_v0  ;;  %v1413_v2 = vld [vmem:[%s1601_s0] sm:$0xff]  ;;  %v1418_v3 = vld [vmem:[%s1601_s0 + $0x8] sm:$0xff]  ;;  %v1423_v5 = vld [vmem:[#allocation5] sm:$0xff]  ;;  %s1346_s0 = smov 120   ;;  %s1348_s15 = smov 88   ;;  %vm105_vm1 = vcmask 64512  }
   0xe   :  { %v57_v4 = vpack.c.bf16 %v1418_v3, %v1413_v2  ;;  %v63_v6 = vperm.slane %v1423_v5, 0  ;;  %v1349_v34 = vmov 1.0   ;;  %s1350_s16 = smov 56   ;;  %vm211_vm2 = vcmask 1043456   ;;  %s1352_s17 = smov 80  }
   0xf   :  { %182 = vmatpush.msra.mxu3 %v1349_v34  ;;  %v1351_v47 = vmov 0   ;;  %s1353_s18 = smov 112   ;;  %s1354_s19 = smov 48   ;;  %vm964_vm9 = vcmask 523264  }
  0x10   :  { %1221 = vset.pattern.permute.xlu0 %v1351_v47  ;;  %1222 = vset.pattern.permute.xlu2 %v1351_v47  ;;  %s1355_s20 = smov 72   ;;  %s1356_s21 = smov 104  }
  0x11   :  { %87 = vmatpush.bf16.msra.mxu0 %v1193_v1  ;;  %1223 = vset.pattern.permute.xlu1 %v1351_v47  ;;  %s1357_s26 = smov 40  }
  0x14   :  { %1130 = vmatmul.msk.bf16.vlgmr.msra.gmra.mxu0 %vm76_vm0, %v57_v4 }
  0x91   :  { %v89_v7 = vpop.f32.mrf.mxu0 }
  0x92   :  { %v90_v8 = vadd.f32 %v89_v7, %v63_v6 }
  0x94   :  { %v98_v9 = vpack.c.bf16 %v90_v8, %v90_v8  ;;  %v94_v8 = vld [vmem:[%s1603_s2] sm:$0xf] }
  0x96   :  { %v101_v10 = vunpack.c.l.b16 %v98_v9 }
  0x98   :  { %v1426_v11 = vpack.c.b16 %v101_v10, %v101_v10 }
  0x99   :  { %v91_v12 = vpop.f32.mrf.mxu0 }
  0x9a   :  { %v92_v13 = vadd.f32 %v91_v12, %v63_v6  ;;  %250 = vrot.lane.b32.xlu2 %v1426_v11, %s1346_s0  ;;  %103 = vrot.lane.b32.xlu0 %v1426_v11, %s1347_s1 }
  0x9c   :  { %v99_v14 = vpack.c.bf16 %v92_v13, %v92_v13 }
  0x9e   :  { %v126_v15 = vunpack.c.l.b16 %v99_v14 }
  0xa0   :  { %v1430_v16 = vpack.c.b16 %v126_v15, %v126_v15 }
  0xa2   :  { %275 = vrot.lane.b32.xlu2 %v1430_v16, %s1348_s15  ;;  %128 = vrot.lane.b32.xlu0 %v1430_v16, %s1347_s1  ;;  %s1359_s1 = smov 128  }
  0xaa   :  { %273 = vrot.lane.b32.xlu0 %v1430_v16, %s1346_s0  ;;  %s1108_s0 = sshll.u32 %s1607_s6, 4  ;;  %s1109_s0 = int_to_ptr.hbm [resolvable:$true] %s1108_s0 }
  0xf4   :  { %v251_v17 = vpop.permute.xlu2 %250 }
  0xfc   :  { %v276_v20 = vpop.permute.xlu2 %275 }
  0xfd   :  { %v281_v23 = vsel %vm105_vm1, %v276_v20, 0 }
 0x10c   :  { %v104_v18 = vpop.permute.xlu0 %103 }
 0x10d   :  { %v110_v19 = vsel %vm105_vm1, %v104_v18, 0 }
 0x10e   :  { %119 = vmatpush.bf16.xpose.msra.mxu1 %v110_v19 }
 0x114   :  { %v129_v21 = vpop.permute.xlu0 %128 }
 0x115   :  { %1131 = vmatmul.msk.bf16.vlgmr.msra.gmra.mxu1 %vm105_vm1, %v98_v9  ;;  %v134_v22 = vsel %vm105_vm1, %v129_v21, 0  ;;  %v420_v9 = vsel %vm211_vm2, %v94_v8, 0 }
 0x116   :  { %143 = vmatpush.bf16.xpose.msra.mxu2 %v134_v22 }
 0x11c   :  { %v274_v24 = vpop.permute.xlu0 %273 }
 0x11d   :  { %1132 = vmatmul.msk.bf16.vlgmr.msra.gmra.mxu2 %vm105_vm1, %v99_v14 }
 0x11e   :  { %290 = vmatpush.bf16.xpose.msrb.mxu2 %v281_v23 }
 0x12d   :  { %1138 = vmatmul.msk.bf16.vlgmr.msrb.gmra.mxu2 %vm105_vm1, %v274_v24 }
 0x192   :  { %v121_v25 = vpop.f32.mrf.mxu1 }
 0x193   :  { %v149_v26 = vsel %vm105_vm1, %v121_v25, -inf }
 0x194   :  { %150 = vmax.xlane.f32.xlu1 %v149_v26 }
 0x19a   :  { %v123_v27 = vpop.f32.mrf.mxu1 }
 0x1a0   :  { %v145_v28 = vpop.f32.mrf.mxu2 }
 0x1a1   :  { %v152_v29 = vsel %vm105_vm1, %v145_v28, -inf }
 0x1a2   :  { %153 = vmax.xlane.f32.xlu2 %v152_v29 }
 0x1a8   :  { %v147_v30 = vpop.f32.mrf.mxu2 }
 0x1ad   :  { %252 = vrot.lane.b32.xlu1 %v1426_v11, %s1348_s15  ;;  %s1360_s15 = smov 8  }
 0x1b0   :  { %v1444_v31 = vpop.f32.mrf.mxu2 }
 0x1b1   :  { %v299_v33 = vsel %vm105_vm1, %v1444_v31, -inf }
 0x1b5   :  { %206 = vrot.lane.b32.xlu1 %v1426_v11, %s1343_s29 }
 0x1b8   :  { %v294_v32 = vpop.f32.mrf.mxu2 }
 0x1df   :  { %300 = vmax.xlane.f32.xlu1 %v299_v33 }
 0x1f8   :  { %353 = vrot.lane.b32.xlu1 %v1426_v11, %s1350_s16 }
 0x207   :  { %v151_v35 = vpop.xlane.xlu1 %150 }
 0x208   :  { %v155_v36 = vsub.f32 %v121_v25, %v151_v35 }
 0x20a   :  { %v157_v37 = vmul.f32 1.442695, %v155_v36 }
 0x20c   :  { %1224 = vpow2.f32 %v157_v37 }
 0x212   :  { %v1225_v38 = vpop.eup %1224 }
 0x213   :  { %1133 = vmatmul.msk.f32.vlgmr.msra.gmra.mxu3 %vm105_vm1, %v1225_v38 }
 0x215   :  { %v154_v39 = vpop.xlane.xlu2 %153 }
 0x216   :  { %v156_v40 = vsub.f32 %v145_v28, %v154_v39 }
 0x218   :  { %v159_v41 = vmul.f32 1.442695, %v156_v40 }
 0x21a   :  { %1226 = vpow2.f32 %v159_v41 }
 0x21f   :  { %v253_v42 = vpop.permute.xlu1 %252 }
 0x220   :  { %v1227_v43 = vpop.eup %1226  ;;  %v258_v44 = vsel %vm105_vm1, %v253_v42, 0 }
 0x221   :  { %1134 = vmatmul.msk.f32.gmra.mxu3 %vm105_vm1, %v1227_v43  ;;  %267 = vmatpush.bf16.xpose.msrb.mxu1 %v258_v44  ;;  %v95_v44 = vld [vmem:[%s1603_s2 + $0x4] sm:$0xf] }
 0x227   :  { %v207_v45 = vpop.permute.xlu1 %206 }
 0x228   :  { %1137 = vmatmul.msk.bf16.vlgmr.msrb.gmra.mxu1 %vm105_vm1, %v251_v17  ;;  %v213_v46 = vsel %vm211_vm2, %v207_v45, 0  ;;  %v400_v45 = vsel %vm211_vm2, %v95_v44, 0  ;;  %v96_v44 = vld [vmem:[%s1603_s2 + $0x8] sm:$0xf] }
 0x229   :  { %222 = vmatpush.bf16.msrb.mxu3 %v213_v46  ;;  %409 = vmatpush.bf16.msra.mxu2 %v400_v45  ;;  %v586_v45 = vsel %vm211_vm2, %v96_v44, 0 }
 0x22d   :  { %329 = vmatpush.msra.mxu3 %v1349_v34  ;;  %515 = vmatpush.msrb.mxu2 %v1349_v34 }
 0x252   :  { %v301_v55 = vpop.xlane.xlu1 %300 }
 0x253   :  { %v303_v18 = vsub.f32 %v1444_v31, %v301_v55 }
 0x255   :  { %v306_v19 = vmul.f32 1.442695, %v303_v18 }
 0x26a   :  { %v354_v57 = vpop.permute.xlu1 %353 }
 0x26b   :  { %v359_v61 = vsel %vm211_vm2, %v354_v57, 0 }
 0x296   :  { %v184_v48 = vpop.f32.mrf.mxu3 }
 0x297   :  { %1228 = vrcp.f32 %v184_v48 }
 0x29d   :  { %v1229_v49 = vpop.eup %1228 }
 0x29e   :  { %194 = vperm.xlu0 %1221, %v1229_v49  }
 0x2a4   :  { %v187_v50 = vpop.f32.mrf.mxu3 }
 0x2a5   :  { %1230 = vrcp.f32 %v187_v50  ;;  %v269_v51 = vpop.f32.mrf.mxu1 }
 0x2a6   :  { %v296_v54 = vsel %vm105_vm1, %v269_v51, -inf }
 0x2ab   :  { %v1231_v52 = vpop.eup %1230 }
 0x2ac   :  { %199 = vperm.xlu2 %1222, %v1231_v52  }
 0x2ad   :  { %v271_v53 = vpop.f32.mrf.mxu1 }
 0x2b4   :  { %228 = vrot.lane.b32.xlu2 %v1430_v16, %s1343_s29 }
 0x2bc   :  { %438 = vrot.lane.b32.xlu2 %v1426_v11, %s1352_s17 }
 0x2c4   :  { %436 = vrot.lane.b32.xlu2 %v1426_v11, %s1353_s18 }
 0x2c8   :  { %297 = vmax.xlane.f32.xlu0 %v296_v54 }
 0x2cc   :  { %374 = vrot.lane.b32.xlu2 %v1430_v16, %s1350_s16 }
 0x2d4   :  { %459 = vrot.lane.b32.xlu2 %v1430_v16, %s1353_s18 }
 0x2dc   :  { %539 = vrot.lane.b32.xlu2 %v1426_v11, %s1354_s19 }
 0x2e4   :  { %629 = vrot.lane.b32.xlu2 %v1430_v16, %s1355_s20 }
 0x2ec   :  { %627 = vrot.lane.b32.xlu2 %v1430_v16, %s1356_s21 }
 0x2f4   :  { %606 = vrot.lane.b32.xlu2 %v1426_v11, %s1355_s20 }
 0x306   :  { %v200_v56 = vpop.permute.xlu2 %199 }
 0x307   :  { %v203_v58 = vmul.f32 %v1227_v43, %v200_v56 }
 0x309   :  { %v205_v63 = vpack.c.bf16 %v203_v58, %v203_v58 }
 0x30e   :  { %v229_v59 = vpop.permute.xlu2 %228 }
 0x30f   :  { %v234_v60 = vsel %vm211_vm2, %v229_v59, 0 }
 0x310   :  { %243 = vmatpush.bf16.msrb.mxu0 %v234_v60  ;;  %v195_v62 = vpop.permute.xlu0 %194 }
 0x311   :  { %v202_v0 = vmul.f32 %v1225_v38, %v195_v62 }
 0x313   :  { %v204_v1 = vpack.c.bf16 %v202_v0, %v202_v0  ;;  %1136 = vmatmul.msk.bf16.vlgmr.msrb.gmra.mxu0 %vm105_vm1, %v205_v63 }
 0x314   :  { %368 = vmatpush.bf16.msra.mxu0 %v359_v61 }
 0x315   :  { %1135 = vmatmul.msk.bf16.vlgmr.msrb.gmra.mxu3 %vm105_vm1, %v204_v1 }
 0x316   :  { %v439_v4 = vpop.permute.xlu2 %438  ;;  %429 = vmatpush.bf16.msrb.mxu3 %v420_v9 }
 0x317   :  { %v444_v6 = vsel %vm105_vm1, %v439_v4, 0 }
 0x318   :  { %453 = vmatpush.bf16.xpose.msrb.mxu0 %v444_v6 }
 0x31e   :  { %v437_v7 = vpop.permute.xlu2 %436 }
 0x326   :  { %v375_v10 = vpop.permute.xlu2 %374 }
 0x327   :  { %v380_v12 = vsel %vm211_vm2, %v375_v10, 0 }
 0x328   :  { %389 = vmatpush.bf16.msra.mxu1 %v380_v12 }
 0x32e   :  { %v460_v13 = vpop.permute.xlu2 %459 }
 0x336   :  { %v540_v20 = vpop.permute.xlu2 %539 }
 0x337   :  { %v545_v22 = vsel %vm211_vm2, %v540_v20, 0 }
 0x33b   :  { %v298_v14 = vpop.xlane.xlu0 %297 }
 0x33c   :  { %v302_v15 = vsub.f32 %v269_v51, %v298_v14 }
 0x33e   :  { %v304_v17 = vmul.f32 1.442695, %v302_v15  ;;  %v630_v25 = vpop.permute.xlu2 %629 }
 0x33f   :  { %v635_v29 = vsel %vm105_vm1, %v630_v25, 0 }
 0x340   :  { %1232 = vpow2.f32 %v304_v17 }
 0x341   :  { %1234 = vpow2.f32 %v306_v19 }
 0x346   :  { %v1233_v21 = vpop.eup %1232  ;;  %v628_v46 = vpop.permute.xlu2 %627 }
 0x347   :  { %1139 = vmatmul.msk.f32.vlgmr.msra.gmra.mxu3 %vm105_vm1, %v1233_v21  ;;  %v1235_v23 = vpop.eup %1234 }
 0x348   :  { %554 = vmatpush.bf16.msra.mxu3 %v545_v22 }
 0x34e   :  { %v607_v48 = vpop.permute.xlu2 %606 }
 0x34f   :  { %1140 = vmatmul.msk.f32.gmra.mxu3 %vm105_vm1, %v1235_v23  ;;  %v612_v52 = vsel %vm105_vm1, %v607_v48, 0 }
 0x390   :  { %v245_v24 = vpop.f32.mrf.mxu0 }
 0x398   :  { %v224_v26 = vpop.f32.mrf.mxu3  ;;  %v247_v27 = vpop.f32.mrf.mxu0 }
 0x399   :  { %v249_v28 = vpack.c.bf16 %v245_v24, %v224_v26 }
 0x39b   :  { %1144 = vmatmul.msk.bf16.vlgmr.msrb.gmra.mxu3 %vm105_vm1, %v249_v28 }
 0x39c   :  { %644 = vmatpush.bf16.xpose.msrb.mxu3 %v635_v29 }
 0x3a0   :  { %v226_v30 = vpop.f32.mrf.mxu3 }
 0x3ca   :  { %v331_v31 = vpop.f32.mrf.mxu3 }
 0x3cb   :  { %1236 = vrcp.f32 %v331_v31 }
 0x3d1   :  { %v1237_v32 = vpop.eup %1236 }
 0x3d2   :  { %341 = vperm.xlu0 %1221, %v1237_v32   ;;  %v334_v33 = vpop.f32.mrf.mxu3 }
 0x3d3   :  { %1238 = vrcp.f32 %v334_v33 }
 0x3d9   :  { %v1239_v35 = vpop.eup %1238 }
 0x3da   :  { %346 = vperm.xlu0 %1221, %v1239_v35  }
 0x3e2   :  { %461 = vrot.lane.b32.xlu0 %v1430_v16, %s1352_s17 }
 0x41e   :  { %v431_v19 = vpop.f32.mrf.mxu3 }
 0x426   :  { %v1522_v20 = vpop.f32.mrf.mxu3 }
 0x444   :  { %v342_v36 = vpop.permute.xlu0 %341 }
 0x445   :  { %v349_v37 = vmul.f32 %v1233_v21, %v342_v36 }
 0x447   :  { %v351_v38 = vpack.c.bf16 %v349_v37, %v349_v37 }
 0x449   :  { %1141 = vmatmul.msk.bf16.vlgmr.msra.gmra.mxu0 %vm105_vm1, %v351_v38 }
 0x44c   :  { %v347_v39 = vpop.permute.xlu0 %346 }
 0x44d   :  { %v350_v40 = vmul.f32 %v1235_v23, %v347_v39 }
 0x44f   :  { %v352_v41 = vpack.c.bf16 %v350_v40, %v350_v40 }
 0x451   :  { %1142 = vmatmul.msk.bf16.vlgmr.msra.gmra.mxu1 %vm105_vm1, %v352_v41 }
 0x454   :  { %v462_v42 = vpop.permute.xlu0 %461 }
 0x455   :  { %v467_v43 = vsel %vm105_vm1, %v462_v42, 0 }
 0x456   :  { %476 = vmatpush.bf16.xpose.msrb.mxu1 %v467_v43 }
 0x459   :  { %1145 = vmatmul.msk.bf16.vlgmr.msrb.gmra.mxu0 %vm105_vm1, %v437_v7 }
 0x45e   :  { %595 = vmatpush.bf16.msra.mxu1 %v586_v45 }
 0x461   :  { %1146 = vmatmul.msk.bf16.vlgmr.msrb.gmra.mxu1 %vm105_vm1, %v460_v13 }
 0x4c6   :  { %v370_v47 = vpop.f32.mrf.mxu0 }
 0x4ce   :  { %v372_v49 = vpop.f32.mrf.mxu0  ;;  %v391_v50 = vpop.f32.mrf.mxu1 }
 0x4cf   :  { %v395_v51 = vpack.c.bf16 %v391_v50, %v370_v47 }
 0x4d1   :  { %1143 = vmatmul.msk.bf16.vlgmr.msra.gmra.mxu2 %vm105_vm1, %v395_v51 }
 0x4d2   :  { %621 = vmatpush.bf16.xpose.msra.mxu2 %v612_v52 }
 0x4d6   :  { %v393_v53 = vpop.f32.mrf.mxu1  ;;  %v455_v54 = vpop.f32.mrf.mxu0 }
 0x4d7   :  { %v482_v55 = vsel %vm105_vm1, %v455_v54, -inf }
 0x4d8   :  { %483 = vmax.xlane.f32.xlu1 %v482_v55 }
 0x4de   :  { %v457_v56 = vpop.f32.mrf.mxu0  ;;  %v478_v57 = vpop.f32.mrf.mxu1 }
 0x4df   :  { %v485_v9 = vsel %vm105_vm1, %v478_v57, -inf }
 0x4e6   :  { %v480_v58 = vpop.f32.mrf.mxu1 }
 0x4f1   :  { %604 = vrot.lane.b32.xlu1 %v1426_v11, %s1356_s21 }
 0x4f9   :  { %560 = vrot.lane.b32.xlu1 %v1430_v16, %s1354_s19 }
 0x54b   :  { %v484_v59 = vpop.xlane.xlu1 %483 }
 0x54c   :  { %v488_v60 = vsub.f32 %v455_v54, %v484_v59 }
 0x54e   :  { %v490_v61 = vmul.f32 1.442695, %v488_v60 }
 0x550   :  { %1240 = vpow2.f32 %v490_v61 }
 0x554   :  { %v1513_v4 = vpop.f32.mrf.mxu2 }
 0x555   :  { %v432_v53 = vadd.f32 %v431_v19, %v1513_v4 }
 0x556   :  { %v1241_v62 = vpop.eup %1240 }
 0x557   :  { %1147 = vmatmul.msk.f32.vlgmr.msrb.gmra.mxu2 %vm105_vm1, %v1241_v62 }
 0x558   :  { %1201 = vmatpush.msrb.mxu2 %v1349_v34 }
 0x55c   :  { %v1515_v6 = vpop.f32.mrf.mxu2 }
 0x563   :  { %v605_v63 = vpop.permute.xlu1 %604 }
 0x56b   :  { %v561_v0 = vpop.permute.xlu1 %560 }
 0x56c   :  { %v566_v1 = vsel %vm211_vm2, %v561_v0, 0 }
 0x56d   :  { %575 = vmatpush.bf16.msra.mxu0 %v566_v1 }
 0x571   :  { %683 = vmatpush.msrb.mxu0 %v1349_v34 }
 0x5da   :  { %v517_v7 = vpop.f32.mrf.mxu2 }
 0x5db   :  { %1242 = vrcp.f32 %v517_v7 }
 0x5e1   :  { %v1243_v8 = vpop.eup %1242 }
 0x5e2   :  { %527 = vperm.xlu0 %1221, %v1243_v8  }
 0x60c   :  { %486 = vmax.xlane.f32.xlu0 %v485_v9 }
 0x654   :  { %v528_v10 = vpop.permute.xlu0 %527 }
 0x655   :  { %v535_v12 = vmul.f32 %v1241_v62, %v528_v10 }
 0x657   :  { %v537_v13 = vpack.c.bf16 %v535_v12, %v535_v12  ;;  %v772_v12 = vperm.slane %v1423_v5, 1 }
 0x659   :  { %1149 = vmatmul.msk.bf16.vlgmr.msra.gmra.mxu3 %vm105_vm1, %v537_v13 }
 0x669   :  { %1153 = vmatmul.msk.bf16.vlgmr.msrb.gmra.mxu3 %vm105_vm1, %v628_v46 }
 0x67f   :  { %v487_v14 = vpop.xlane.xlu0 %486 }
 0x680   :  { %v489_v15 = vsub.f32 %v478_v57, %v487_v14 }
 0x682   :  { %v492_v17 = vmul.f32 1.442695, %v489_v15  ;;  %v434_v15 = vadd.f32 %v1522_v20, %v1515_v6 }
 0x684   :  { %1244 = vpow2.f32 %v492_v17 }
 0x68a   :  { %v1245_v18 = vpop.eup %1244 }
 0x68b   :  { %1148 = vmatmul.msk.f32.gmra.mxu2 %vm105_vm1, %v1245_v18 }
 0x693   :  { %1152 = vmatmul.msk.bf16.vlgmr.msra.gmra.mxu2 %vm105_vm1, %v605_v63 }
 0x6dc   :  { %v556_v21 = vpop.f32.mrf.mxu3 }
 0x6e4   :  { %v558_v22 = vpop.f32.mrf.mxu3 }
 0x6ec   :  { %v646_v23 = vpop.f32.mrf.mxu3 }
 0x6ed   :  { %v653_v24 = vsel %vm105_vm1, %v646_v23, -inf }
 0x6ee   :  { %654 = vmax.xlane.f32.xlu2 %v653_v24 }
 0x6f4   :  { %v648_v25 = vpop.f32.mrf.mxu3 }
 0x706   :  { %728 = vrot.lane.b32.xlu2 %v1430_v16, %s1357_s26 }
 0x70e   :  { %v520_v26 = vpop.f32.mrf.mxu2 }
 0x70f   :  { %1246 = vrcp.f32 %v520_v26 }
 0x715   :  { %v1247_v27 = vpop.eup %1246 }
 0x716   :  { %v623_v28 = vpop.f32.mrf.mxu2  ;;  %532 = vperm.xlu0 %1221, %v1247_v27  }
 0x717   :  { %v650_v29 = vsel %vm105_vm1, %v623_v28, -inf }
 0x718   :  { %651 = vmax.xlane.f32.xlu1 %v650_v29 }
 0x71e   :  { %v625_v30 = vpop.f32.mrf.mxu2 }
 0x761   :  { %v655_v31 = vpop.xlane.xlu2 %654 }
 0x762   :  { %v657_v32 = vsub.f32 %v646_v23, %v655_v31 }
 0x764   :  { %v660_v33 = vmul.f32 1.442695, %v657_v32 }
 0x766   :  { %1248 = vpow2.f32 %v660_v33 }
 0x769   :  { %v729_v35 = vpop.permute.xlu2 %728 }
 0x76a   :  { %v734_v36 = vsel %vm211_vm2, %v729_v35, 0 }
 0x76b   :  { %743 = vmatpush.bf16.msra.mxu2 %v734_v36 }
 0x76c   :  { %v1249_v37 = vpop.eup %1248 }
 0x76d   :  { %1155 = vmatmul.msk.f32.vlgmr.msrb.gmra.mxu2 %vm105_vm1, %v1249_v37 }
 0x788   :  { %v533_v16 = vpop.permute.xlu0 %532 }
 0x789   :  { %v536_v38 = vmul.f32 %v1245_v18, %v533_v16 }
 0x78b   :  { %v538_v39 = vpack.c.bf16 %v536_v38, %v536_v38  ;;  %v652_v40 = vpop.xlane.xlu1 %651 }
 0x78c   :  { %v656_v41 = vsub.f32 %v623_v28, %v652_v40 }
 0x78d   :  { %1150 = vmatmul.msk.bf16.vlgmr.msra.gmra.mxu0 %vm105_vm1, %v538_v39 }
 0x78e   :  { %795 = vmatpush.msra.mxu0 %v1349_v34  ;;  %v658_v42 = vmul.f32 1.442695, %v656_v41 }
 0x790   :  { %796 = vmatpush.msra.mxu0 %v1349_v34  ;;  %1250 = vpow2.f32 %v658_v42 }
 0x792   :  { %797 = vmatpush.msra.mxu0 %v1349_v34 }
 0x794   :  { %798 = vmatpush.msra.mxu0 %v1349_v34 }
 0x796   :  { %v1251_v43 = vpop.eup %1250 }
 0x79d   :  { %1154 = vmatmul.msk.f32.vlgmr.msrb.gmra.mxu0 %vm105_vm1, %v1251_v43 }
 0x79e   :  { %1002 = vmatpush.msrb.mxu0 %v1349_v34 }
 0x7a0   :  { %1003 = vmatpush.msrb.mxu0 %v1349_v34 }
 0x7a2   :  { %1004 = vmatpush.msrb.mxu0 %v1349_v34 }
 0x7a4   :  { %1005 = vmatpush.msrb.mxu0 %v1349_v34 }
 0x7f0   :  { %v688_v50 = vpop.f32.mrf.mxu2 }
 0x80a   :  { %v577_v46 = vpop.f32.mrf.mxu0 }
 0x80b   :  { %v581_v47 = vpack.c.bf16 %v577_v46, %v556_v21 }
 0x80d   :  { %1151 = vmatmul.msk.bf16.vlgmr.msra.gmra.mxu1 %vm105_vm1, %v581_v47 }
 0x812   :  { %v579_v48 = vpop.f32.mrf.mxu0 }
 0x81a   :  { %v685_v49 = vpop.f32.mrf.mxu0 }
 0x81b   :  { %1252 = vrcp.f32 %v685_v49 }
 0x81c   :  { %1254 = vrcp.f32 %v688_v50  ;;  %v1196_v50 = vld [vmem:[#allocation2 + $0x8] sm:$0xff] }
 0x81d   :  { %920 = vmatpush.bf16.msrb.mxu2 %v1196_v50 }
 0x821   :  { %v1253_v51 = vpop.eup %1252 }
 0x822   :  { %695 = vperm.xlu0 %1221, %v1253_v51   ;;  %v1255_v52 = vpop.eup %1254  ;;  %v1195_v51 = vld [vmem:[#allocation2] sm:$0xff] }
 0x823   :  { %921 = vmatpush.bf16.msrb.mxu2 %v1195_v51  ;;  %v1097_v51 = vperm.slane %v1423_v5, 7 }
 0x82a   :  { %700 = vperm.xlu0 %1221, %v1255_v52  }
 0x832   :  { %707 = vrot.lane.b32.xlu0 %v1426_v11, %s1357_s26  ;;  %v97_v11 = vld [vmem:[%s1603_s2 + $0xc] sm:$0xf] }
 0x833   :  { %v754_v0 = vsel %vm211_vm2, %v97_v11, 0  ;;  %v1199_v11 = vld [vmem:[%s1605_s4 + $0x10] sm:$0xff] }
 0x834   :  { %763 = vmatpush.bf16.msra.mxu3 %v754_v0  ;;  %v1198_v0 = vld [vmem:[%s1605_s4 + $0x8] sm:$0xff] }
 0x88a   :  { %v597_v54 = vpop.f32.mrf.mxu1 }
 0x88b   :  { %v602_v55 = vadd.f32 %v597_v54, %v432_v53  ;;  %v887_v53 = vperm.slane %v1423_v5, 2 }
 0x892   :  { %v599_v1 = vpop.f32.mrf.mxu1 }
 0x893   :  { %v603_v18 = vadd.f32 %v599_v1, %v434_v15  ;;  %v1197_v1 = vld [vmem:[%s1605_s4] sm:$0xff] }
 0x894   :  { %v696_v56 = vpop.permute.xlu0 %695 }
 0x895   :  { %v703_v60 = vmul.f32 %v1251_v43, %v696_v56  ;;  %v890_v56 = vperm.slane %v1423_v5, 3 }
 0x897   :  { %v705_v63 = vpack.c.bf16 %v703_v60, %v703_v60 }
 0x89c   :  { %v701_v57 = vpop.permute.xlu0 %700 }
 0x89d   :  { %v704_v58 = vmul.f32 %v1249_v37, %v701_v57 }
 0x89f   :  { %v706_v59 = vpack.c.bf16 %v704_v58, %v704_v58 }
 0x8a1   :  { %1157 = vmatmul.msk.bf16.vlgmr.msra.gmra.mxu2 %vm105_vm1, %v706_v59 }
 0x8a4   :  { %v708_v61 = vpop.permute.xlu0 %707 }
 0x8a5   :  { %v713_v62 = vsel %vm211_vm2, %v708_v61, 0 }
 0x8a6   :  { %722 = vmatpush.bf16.msrb.mxu1 %v713_v62 }
 0x8a9   :  { %1156 = vmatmul.msk.bf16.vlgmr.msrb.gmra.mxu1 %vm105_vm1, %v705_v63  ;;  %v1200_v63 = vld [vmem:[%s1605_s4 + $0x18] sm:$0xff]  ;;  %s1358_s4 = smov [#allocation7]  }
 0x8aa   :  { %840 = vmatpush.msra.mxu1 %v1349_v34  ;;  %972 = vmatpush.bf16.msrb.mxu3 %v1200_v63  ;;  %s1106_s12 = sshll.u32 %s1358_s4, 4  ;;  %s1107_s12 = int_to_ptr.vmem [resolvable:$true] %s1106_s12 }
 0x8ac   :  { %841 = vmatpush.msra.mxu1 %v1349_v34 }
 0x8ae   :  { %842 = vmatpush.msra.mxu1 %v1349_v34  ;;  %973 = vmatpush.bf16.msrb.mxu3 %v1199_v11 }
 0x8b0   :  { %843 = vmatpush.msra.mxu1 %v1349_v34 }
 0x8b2   :  { %1047 = vmatpush.msrb.mxu1 %v1349_v34  ;;  %974 = vmatpush.bf16.msrb.mxu3 %v1198_v0 }
 0x8b4   :  { %1048 = vmatpush.msrb.mxu1 %v1349_v34 }
 0x8b6   :  { %1049 = vmatpush.msrb.mxu1 %v1349_v34  ;;  %975 = vmatpush.bf16.msrb.mxu3 %v1197_v1 }
 0x8b8   :  { %1050 = vmatpush.msrb.mxu1 %v1349_v34 }
 0x924   :  { %v745_v4 = vpop.f32.mrf.mxu2 }
 0x926   :  { %v724_v7 = vpop.f32.mrf.mxu1 }
 0x927   :  { %v749_v8 = vpack.c.bf16 %v745_v4, %v724_v7  ;;  %v898_v7 = vperm.slane %v1423_v5, 4 }
 0x929   :  { %1158 = vmatmul.msk.bf16.vlgmr.msra.gmra.mxu3 %vm105_vm1, %v749_v8 }
 0x92c   :  { %v747_v9 = vpop.f32.mrf.mxu2 }
 0x92e   :  { %v726_v10 = vpop.f32.mrf.mxu1 }
 0x9ac   :  { %v765_v13 = vpop.f32.mrf.mxu3 }
 0x9ad   :  { %v770_v14 = vadd.f32 %v765_v13, %v602_v55 }
 0x9af   :  { %v773_v34 = vadd.f32 %v772_v12, %v770_v14 }
 0x9b1   :  { %v775_v17 = vadd.f32 %v773_v34, %v1413_v2  ;;  %v939_v34 = vperm.slane %v1423_v5, 5 }
 0x9b3   :  { %1159 = vmatmul.msk.f32.vlgmr.msra.gmra.mxu0 %vm76_vm0, %v775_v17 }
 0x9b4   :  { %v767_v19 = vpop.f32.mrf.mxu3 }
 0x9b5   :  { %v771_v21 = vadd.f32 %v767_v19, %v603_v18 }
 0x9b7   :  { %v774_v22 = vadd.f32 %v772_v12, %v771_v21 }
 0x9b9   :  { %v776_v23 = vadd.f32 %v774_v22, %v1418_v3 }
 0x9bb   :  { %1160 = vmatmul.msk.f32.gmra.mxu0 %vm76_vm0, %v776_v23 }
 0xa30   :  { %v800_v24 = vpop.f32.mrf.mxu0 }
 0xa31   :  { %v806_v25 = vmul.f32 0.03125, %v800_v24 }
 0xa33   :  { %810 = vperm.xlu0 %1221, %v806_v25  }
 0xa38   :  { %v803_v26 = vpop.f32.mrf.mxu0 }
 0xa39   :  { %v807_v27 = vmul.f32 0.03125, %v803_v26 }
 0xa3b   :  { %815 = vperm.xlu2 %1222, %v807_v27  }
 0xa95   :  { %v816_v2 = vpop.permute.xlu2 %815 }
 0xa96   :  { %v819_v29 = vsub.f32 %v776_v23, %v816_v2 }
 0xa98   :  { %v821_v30 = vmul.f32 %v819_v29, %v819_v29 }
 0xaa5   :  { %v811_v28 = vpop.permute.xlu0 %810 }
 0xaa6   :  { %v818_v6 = vsub.f32 %v775_v17, %v811_v28 }
 0xaa8   :  { %v820_v20 = vmul.f32 %v818_v6, %v818_v6 }
 0xaaa   :  { %1161 = vmatmul.msk.f32.vlgmr.msra.gmra.mxu1 %vm76_vm0, %v820_v20 }
 0xab2   :  { %1162 = vmatmul.msk.f32.gmra.mxu1 %vm76_vm0, %v821_v30 }
 0xb27   :  { %v845_v31 = vpop.f32.mrf.mxu1 }
 0xb28   :  { %v851_v3 = vmul.f32 0.03125, %v845_v31 }
 0xb2a   :  { %v853_v32 = vadd.f32 1e-05, %v851_v3 }
 0xb2c   :  { %1256 = vrsqrt.f32 %v853_v32  ;;  %vm861_vm4 = vweird.f32 %v853_v32 }
 0xb2f   :  { %v848_v33 = vpop.f32.mrf.mxu1 }
 0xb30   :  { %v852_v35 = vmul.f32 0.03125, %v848_v33 }
 0xb32   :  { %v1257_v36 = vpop.eup %1256  ;;  %v854_v37 = vadd.f32 1e-05, %v852_v35 }
 0xb33   :  { %v856_v16 = vmul.f32 %v1257_v36, %v853_v32  ;;  %vm862_vm3 = vweird.f32 %v1257_v36 }
 0xb34   :  { %1258 = vrsqrt.f32 %v854_v37  ;;  %vm863_vm5 = vmor %vm861_vm4, %vm862_vm3  ;;  %vm871_vm7 = vweird.f32 %v854_v37 }
 0xb35   :  { %v857_v38 = vmul.f32 %v1257_v36, %v856_v16 }
 0xb37   :  { %v858_v39 = vmul.f32 0.5, %v857_v38 }
 0xb39   :  { %v859_v40 = vsub.f32 1.5, %v858_v39 }
 0xb3a   :  { %v1259_v41 = vpop.eup %1258 }
 0xb3b   :  { %v866_v42 = vmul.f32 %v1259_v41, %v854_v37  ;;  %v860_v43 = vmul.f32 %v1257_v36, %v859_v40  ;;  %vm872_vm6 = vweird.f32 %v1259_v41 }
 0xb3c   :  { %vm873_vm8 = vmor %vm871_vm7, %vm872_vm6 }
 0xb3d   :  { %v867_v44 = vmul.f32 %v1259_v41, %v866_v42  ;;  %v864_v45 = vsel %vm863_vm5, %v1257_v36, %v860_v43 }
 0xb3e   :  { %877 = vperm.xlu0 %1221, %v864_v45  }
 0xb3f   :  { %v868_v46 = vmul.f32 0.5, %v867_v44 }
 0xb41   :  { %v869_v47 = vsub.f32 1.5, %v868_v46 }
 0xb43   :  { %v870_v48 = vmul.f32 %v1259_v41, %v869_v47 }
 0xb45   :  { %v874_v49 = vsel %vm873_vm8, %v1259_v41, %v870_v48 }
 0xb46   :  { %882 = vperm.xlu1 %1223, %v874_v49   ;;  %v1094_v49 = vperm.slane %v1423_v5, 6 }
 0xbb0   :  { %v878_v52 = vpop.permute.xlu0 %877 }
 0xbb1   :  { %v885_v54 = vmul.f32 %v878_v52, %v818_v6 }
 0xbb3   :  { %v888_v57 = vmul.f32 %v887_v53, %v885_v54 }
 0xbb5   :  { %v891_v60 = vadd.f32 %v890_v56, %v888_v57 }
 0xbb8   :  { %v883_v55 = vpop.permute.xlu1 %882 }
 0xbb9   :  { %v886_v58 = vmul.f32 %v883_v55, %v819_v29 }
 0xbbb   :  { %v889_v59 = vmul.f32 %v887_v53, %v886_v58 }
 0xbbd   :  { %v892_v61 = vadd.f32 %v890_v56, %v889_v59 }
 0xbbf   :  { %v893_v62 = vpack.c.bf16 %v892_v61, %v891_v60 }
 0xbc1   :  { %1171 = vmatmul.msk.bf16.vlgmr.msrb.gmra.mxu2 %vm76_vm0, %v893_v62 }
 0xc44   :  { %v923_v4 = vpop.f32.mrf.mxu2 }
 0xc45   :  { %v924_v8 = vadd.f32 %v923_v4, %v898_v7 }
 0xc47   :  { %v928_v12 = vmax.f32 %v924_v8, 0.0 }
 0xc4c   :  { %v925_v9 = vpop.f32.mrf.mxu2 }
 0xc4d   :  { %v926_v10 = vadd.f32 %v925_v9, %v898_v7 }
 0xc4f   :  { %v929_v13 = vmax.f32 %v926_v10, 0.0 }
 0xc51   :  { %v930_v14 = vpack.c.bf16 %v929_v13, %v928_v12 }
 0xc53   :  { %1188 = vmatmul.msk.bf16.vlgmr.msrb.gmra.mxu3 %vm964_vm9, %v930_v14 }
 0xcd6   :  { %v977_v15 = vpop.f32.mrf.mxu3 }
 0xcd7   :  { %v978_v17 = vadd.f32 %v977_v15, %v939_v34 }
 0xcd9   :  { %v982_v18 = vadd.f32 %v978_v17, %v891_v60 }
 0xcdb   :  { %1189 = vmatmul.msk.f32.vlgmr.msrb.gmra.mxu0 %vm76_vm0, %v982_v18 }
 0xcde   :  { %v979_v19 = vpop.f32.mrf.mxu3 }
 0xcdf   :  { %v980_v21 = vadd.f32 %v979_v19, %v939_v34 }
 0xce1   :  { %v983_v22 = vadd.f32 %v980_v21, %v892_v61 }
 0xce3   :  { %1190 = vmatmul.msk.f32.gmra.mxu0 %vm76_vm0, %v983_v22 }
 0xd58   :  { %v1007_v23 = vpop.f32.mrf.mxu0 }
 0xd59   :  { %v1013_v24 = vmul.f32 0.03125, %v1007_v23 }
 0xd5b   :  { %1017 = vperm.xlu2 %1222, %v1013_v24  }
 0xd60   :  { %v1010_v25 = vpop.f32.mrf.mxu0 }
 0xd61   :  { %v1014_v26 = vmul.f32 0.03125, %v1010_v25 }
 0xd63   :  { %1022 = vperm.xlu0 %1221, %v1014_v26  }
 0xdb5   :  { %v1018_v27 = vpop.permute.xlu2 %1017 }
 0xdb6   :  { %v1025_v28 = vsub.f32 %v982_v18, %v1018_v27 }
 0xdb8   :  { %v1027_v6 = vmul.f32 %v1025_v28, %v1025_v28 }
 0xdba   :  { %1191 = vmatmul.msk.f32.vlgmr.msrb.gmra.mxu1 %vm76_vm0, %v1027_v6 }
 0xdd5   :  { %v1023_v20 = vpop.permute.xlu0 %1022 }
 0xdd6   :  { %v1026_v2 = vsub.f32 %v983_v22, %v1023_v20 }
 0xdd8   :  { %v1028_v29 = vmul.f32 %v1026_v2, %v1026_v2 }
 0xdda   :  { %1192 = vmatmul.msk.f32.gmra.mxu1 %vm76_vm0, %v1028_v29 }
 0xe37   :  { %v1052_v30 = vpop.f32.mrf.mxu1 }
 0xe38   :  { %v1058_v31 = vmul.f32 0.03125, %v1052_v30 }
 0xe3a   :  { %v1060_v3 = vadd.f32 1e-05, %v1058_v31 }
 0xe3c   :  { %1260 = vrsqrt.f32 %v1060_v3  ;;  %vm1068_vm11 = vweird.f32 %v1060_v3 }
 0xe42   :  { %v1261_v32 = vpop.eup %1260 }
 0xe43   :  { %v1063_v33 = vmul.f32 %v1261_v32, %v1060_v3  ;;  %vm1069_vm10 = vweird.f32 %v1261_v32 }
 0xe44   :  { %vm1070_vm12 = vmor %vm1068_vm11, %vm1069_vm10 }
 0xe45   :  { %v1064_v35 = vmul.f32 %v1261_v32, %v1063_v33 }
 0xe47   :  { %v1065_v36 = vmul.f32 0.5, %v1064_v35 }
 0xe49   :  { %v1066_v37 = vsub.f32 1.5, %v1065_v36 }
 0xe4b   :  { %v1067_v16 = vmul.f32 %v1261_v32, %v1066_v37 }
 0xe4d   :  { %v1071_v38 = vsel %vm1070_vm12, %v1261_v32, %v1067_v16 }
 0xe4e   :  { %1084 = vperm.xlu2 %1222, %v1071_v38  }
 0xe57   :  { %v1055_v39 = vpop.f32.mrf.mxu1 }
 0xe58   :  { %v1059_v40 = vmul.f32 0.03125, %v1055_v39 }
 0xe5a   :  { %v1061_v41 = vadd.f32 1e-05, %v1059_v40 }
 0xe5c   :  { %1262 = vrsqrt.f32 %v1061_v41  ;;  %vm1078_vm14 = vweird.f32 %v1061_v41 }
 0xe62   :  { %v1263_v42 = vpop.eup %1262 }
 0xe63   :  { %v1073_v43 = vmul.f32 %v1263_v42, %v1061_v41  ;;  %vm1079_vm13 = vweird.f32 %v1263_v42 }
 0xe64   :  { %vm1080_vm15 = vmor %vm1078_vm14, %vm1079_vm13 }
 0xe65   :  { %v1074_v44 = vmul.f32 %v1263_v42, %v1073_v43 }
 0xe67   :  { %v1075_v45 = vmul.f32 0.5, %v1074_v44 }
 0xe69   :  { %v1076_v46 = vsub.f32 1.5, %v1075_v45 }
 0xe6b   :  { %v1077_v47 = vmul.f32 %v1263_v42, %v1076_v46 }
 0xe6d   :  { %v1081_v48 = vsel %vm1080_vm15, %v1263_v42, %v1077_v47 }
 0xe6e   :  { %1089 = vperm.xlu0 %1221, %v1081_v48  }
 0xea8   :  { %v1085_v50 = vpop.permute.xlu2 %1084 }
 0xea9   :  { %v1092_v52 = vmul.f32 %v1085_v50, %v1025_v28 }
 0xeab   :  { %v1095_v53 = vmul.f32 %v1094_v49, %v1092_v52 }
 0xead   :  { %v1098_v54 = vadd.f32 %v1097_v51, %v1095_v53 }
 0xeaf   :  { %1100 = vst.msk [vmem:[#allocation7] sm:$0xff] %vm76_vm0, %v1098_v54 }
 0xee0   :  { %v1090_v55 = vpop.permute.xlu0 %1089 }
 0xee1   :  { %v1093_v56 = vmul.f32 %v1090_v55, %v1026_v2 }
 0xee3   :  { %v1096_v57 = vmul.f32 %v1094_v49, %v1093_v56 }
 0xee5   :  { %v1099_v58 = vadd.f32 %v1097_v51, %v1096_v57 }
 0xee7   :  { %1101 = vst.msk [vmem:[#allocation7 + $0x8] sm:$0xff] %vm76_vm0, %v1099_v58 }
 0xee8   :  { %1114 = dma.vmem_to_hbm [thread:$0]  %s1107_s12, 256, %s1109_s0, [#allocation4], %s1359_s1, %s1359_s1, %s1360_s15  }
 0xee9   :  { %1340 = dma.done.wait [#allocation4], 256  }
 0xeea   :  { %1341 = vsyncadd [#allocation4], 4294967040 }
 0xeeb   :  { %1119 = vsyncpa [#allocation3], 1 }
 0xeec   :  { %1120 = vsyncpa [#allocation6], 1 }
 0xeed   :  { %1121 = vsyncpa [#allocation4], 1 }

</bundles_post_ra>
